<compile_context>
chip_gen: v7x
topology: tpu7x:2x2x1
jax: 0.10.0
libtpu: 0.0.40
codegen_flags: <defaults>
</compile_context>

<pallas_src>
import jax
import jax.numpy as jnp
from jax.experimental import pallas as pl
from jax.experimental.pallas import tpu as pltpu


def _round_up(x, m):
    return ((x + m - 1) // m) * m


def mlp_kernel(x_ref, w1_ref, b1_ref, w2_ref, b2_ref, w3_ref, b3_ref, o_ref):
    # Layer 1: Linear(F, 64) + ReLU.  bf16 operands, f32 MXU accumulation.
    h1 = jnp.dot(x_ref[...], w1_ref[...], preferred_element_type=jnp.float32)
    h1 = jnp.maximum(h1 + b1_ref[...], 0.0)                      # (TB, 64) f32

    # Layer 2: Linear(64, 32) + ReLU.
    h2 = jnp.dot(h1.astype(w2_ref.dtype), w2_ref[...],
                 preferred_element_type=jnp.float32)
    h2 = jnp.maximum(h2 + b2_ref[...], 0.0)                      # (TB, 32) f32

    # Layer 3: Linear(32, 1) + Sigmoid, computed as w3 @ h2^T (contract the
    # 32-feature axis of both operands).  This avoids the MXU-hostile
    # [TB,32]x[32,1] shape and lands the result lane-dense: (1, TB) with the
    # batch on the lane axis -> full-width vector stores.
    h3 = jax.lax.dot_general(
        w3_ref[...], h2,
        dimension_numbers=(((1,), (1,)), ((), ())),
        preferred_element_type=jnp.float32)                      # (1, TB) f32
    res = jax.nn.sigmoid(h3 + b3_ref[...])                       # (1, TB) f32
    o_ref[...] = res[None].astype(o_ref.dtype)                   # (1, 1, TB)


def tennis_predictor(x, params, *, max_tile=2048):
    """x: [B, F] float32 -> [B, 1] float32 (sigmoid probabilities)."""
    w1, b1, w2, b2, w3, b3 = params
    B, F = x.shape

    # Batch tile: as large as fits a modest per-buffer VMEM budget (Pallas
    # double-buffers the x tile); multiple of 16 for bf16 sublane packing.
    budget_bytes = 8 * 1024 * 1024                    # per x-tile buffer
    tb = min(max_tile, max(16, budget_bytes // max(1, F * 2)))
    tb = max(16, (tb // 16) * 16)
    tb = min(tb, _round_up(B, 16))
    b_pad = _round_up(B, tb)
    grid = (b_pad // tb,)

    # bf16 for the big matmul operands; biases / layer-3 params stay f32.
    xb = x.astype(jnp.bfloat16)
    if b_pad != B:
        xb = jnp.pad(xb, ((0, b_pad - B), (0, 0)))
    w1b = w1.astype(jnp.bfloat16)
    w2b = w2.astype(jnp.bfloat16)
    b1f = b1.astype(jnp.float32)
    b2f = b2.astype(jnp.float32)
    w3f = w3.astype(jnp.float32)                       # (1, 32)
    b3f = b3.astype(jnp.float32)                       # (1, 1)

    # Weights/biases: full-array blocks, constant index_map -> VMEM resident.
    full = lambda a: pl.BlockSpec(a.shape, lambda i: (0,) * a.ndim)

    flops = 2 * b_pad * (F * 64 + 64 * 32 + 32)
    bytes_accessed = (xb.size * 2 + w1b.size * 2 + w2b.size * 2
                      + (b1f.size + b2f.size + w3f.size + b3f.size) * 4
                      + b_pad * 4)
    cost = pl.CostEstimate(flops=flops, transcendentals=b_pad,
                           bytes_accessed=bytes_accessed)

    out = pl.pallas_call(
        mlp_kernel,
        out_shape=jax.ShapeDtypeStruct((grid[0], 1, tb), jnp.float32),
        grid_spec=pltpu.PrefetchScalarGridSpec(
            num_scalar_prefetch=0,
            grid=grid,
            in_specs=[
                pl.BlockSpec((tb, F), lambda i: (i, 0)),   # x batch tile
                full(w1b), full(b1f),
                full(w2b), full(b2f),
                full(w3f), full(b3f),
            ],
            out_specs=pl.BlockSpec((1, 1, tb), lambda i: (i, 0, 0)),
        ),
        compiler_params=pltpu.CompilerParams(
            dimension_semantics=("parallel",)),
        cost_estimate=cost,
    )(xb, w1b, b1f, w2b, b2f, w3f, b3f)

    # Lane-dense (G, 1, TB) slab -> (B, 1) column (pure layout plumbing).
    return out.reshape(b_pad, 1)[:B]


def init_params(key, input_size):
    """Deterministic init matching TennisPredictor.__init__ shapes.

    W1/W2 are stored [in, out] (transposed vs. PyTorch); W3 is stored in the
    PyTorch fc3.weight layout [1, 32]; biases as [1, out]."""
    k1, k2, k3, k4, k5, k6 = jax.random.split(key, 6)
    s = 0.1
    w1 = s * jax.random.normal(k1, (input_size, 64), jnp.float32)
    b1 = s * jax.random.normal(k2, (1, 64), jnp.float32)
    w2 = s * jax.random.normal(k3, (64, 32), jnp.float32)
    b2 = s * jax.random.normal(k4, (1, 32), jnp.float32)
    w3 = s * jax.random.normal(k5, (1, 32), jnp.float32)
    b3 = s * jax.random.normal(k6, (1, 1), jnp.float32)
    return (w1, b1, w2, b2, w3, b3)


def reference_forward(x, params):
    """Plain-JAX reference mirroring the kernel's bf16/f32 mixed precision."""
    w1, b1, w2, b2, w3, b3 = params
    xb = x.astype(jnp.bfloat16)
    h1 = jnp.maximum(
        jnp.dot(xb, w1.astype(jnp.bfloat16),
                preferred_element_type=jnp.float32) + b1, 0.0)
    h2 = jnp.maximum(
        jnp.dot(h1.astype(jnp.bfloat16), w2.astype(jnp.bfloat16),
                preferred_element_type=jnp.float32) + b2, 0.0)
    h3 = jnp.dot(h2, w3.T, preferred_element_type=jnp.float32) + b3
    return jax.nn.sigmoid(h3)


if __name__ == "__main__":
    key = jax.random.PRNGKey(0)
    kx, kp = jax.random.split(key)

    batch = 8
    input_size = 16  # stand-in for X_train.shape[1]

    x = jax.random.normal(kx, (batch, input_size), jnp.float32)
    params = init_params(kp, input_size)

    out = tennis_predictor(x, params)
    out = jax.block_until_ready(out)

    ref = reference_forward(x, params)
    assert out.shape == (batch, 1), out.shape
    assert jnp.allclose(out, ref, atol=1e-4, rtol=1e-4), (out, ref)

    print("KERNEL_OK")
</pallas_src>

<mosaic_0001>
module attributes {stable_mosaic.version = 11 : i64} {
  func.func @mlp_kernel(%arg0: i32, %arg1: memref<16x16xbf16, #tpu.memory_space<vmem>>, %arg2: memref<16x64xbf16, #tpu.memory_space<vmem>>, %arg3: memref<1x64xf32, #tpu.memory_space<vmem>>, %arg4: memref<64x32xbf16, #tpu.memory_space<vmem>>, %arg5: memref<1x32xf32, #tpu.memory_space<vmem>>, %arg6: memref<1x32xf32, #tpu.memory_space<vmem>>, %arg7: memref<1x1xf32, #tpu.memory_space<vmem>>, %arg8: memref<1x1x16xf32, #tpu.memory_space<vmem>>) attributes {dimension_semantics = [#tpu.dimension_semantics<parallel>], iteration_bounds = array<i64: 1>, scalar_prefetch = 0 : i64, scratch_operands = 0 : i64, tpu.core_type = #tpu.core_type<tc>, window_params = [{transform_indices = @transform_0, window_bounds = array<i64: 16, 16>}, {pipeline_mode = #tpu.pipeline_mode<synchronous>, transform_indices = @transform_1, window_bounds = array<i64: 16, 64>}, {pipeline_mode = #tpu.pipeline_mode<synchronous>, transform_indices = @transform_2, window_bounds = array<i64: 1, 64>}, {pipeline_mode = #tpu.pipeline_mode<synchronous>, transform_indices = @transform_3, window_bounds = array<i64: 64, 32>}, {pipeline_mode = #tpu.pipeline_mode<synchronous>, transform_indices = @transform_4, window_bounds = array<i64: 1, 32>}, {pipeline_mode = #tpu.pipeline_mode<synchronous>, transform_indices = @transform_5, window_bounds = array<i64: 1, 32>}, {pipeline_mode = #tpu.pipeline_mode<synchronous>, transform_indices = @transform_6, window_bounds = array<i64: 1, 1>}, {transform_indices = @transform_7, window_bounds = array<i64: 1, 1, 16>}]} {
    %c0 = arith.constant 0 : index
    %c0_0 = arith.constant 0 : index
    %0 = vector.load %arg1[%c0, %c0_0] : memref<16x16xbf16, #tpu.memory_space<vmem>>, vector<16x16xbf16>
    %c0_1 = arith.constant 0 : index
    %c0_2 = arith.constant 0 : index
    %1 = vector.load %arg2[%c0_1, %c0_2] : memref<16x64xbf16, #tpu.memory_space<vmem>>, vector<16x64xbf16>
    %cst = arith.constant dense<0.000000e+00> : vector<16x64xf32>
    %2 = tpu.matmul %0, %1, %cst {dimension_numbers = #tpu.dot_dimension_numbers<[1], [0], [0], [1], [0, 0, 1, 1], [], []>} : vector<16x16xbf16>, vector<16x64xbf16>, vector<16x64xf32> -> vector<16x64xf32>
    %c0_3 = arith.constant 0 : index
    %c0_4 = arith.constant 0 : index
    %3 = vector.load %arg3[%c0_3, %c0_4] : memref<1x64xf32, #tpu.memory_space<vmem>>, vector<1x64xf32>
    %4 = vector.broadcast %3 : vector<1x64xf32> to vector<16x64xf32>
    %5 = arith.addf %2, %4 : vector<16x64xf32>
    %cst_5 = arith.constant 0.000000e+00 : f32
    %6 = vector.broadcast %cst_5 : f32 to vector<16x64xf32>
    %7 = arith.maximumf %5, %6 : vector<16x64xf32>
    %8 = arith.truncf %7 : vector<16x64xf32> to vector<16x64xbf16>
    %c0_6 = arith.constant 0 : index
    %c0_7 = arith.constant 0 : index
    %9 = vector.load %arg4[%c0_6, %c0_7] : memref<64x32xbf16, #tpu.memory_space<vmem>>, vector<64x32xbf16>
    %cst_8 = arith.constant dense<0.000000e+00> : vector<16x32xf32>
    %10 = tpu.matmul %8, %9, %cst_8 {dimension_numbers = #tpu.dot_dimension_numbers<[1], [0], [0], [1], [0, 0, 1, 1], [], []>} : vector<16x64xbf16>, vector<64x32xbf16>, vector<16x32xf32> -> vector<16x32xf32>
    %c0_9 = arith.constant 0 : index
    %c0_10 = arith.constant 0 : index
    %11 = vector.load %arg5[%c0_9, %c0_10] : memref<1x32xf32, #tpu.memory_space<vmem>>, vector<1x32xf32>
    %12 = vector.broadcast %11 : vector<1x32xf32> to vector<16x32xf32>
    %13 = arith.addf %10, %12 : vector<16x32xf32>
    %cst_11 = arith.constant 0.000000e+00 : f32
    %14 = vector.broadcast %cst_11 : f32 to vector<16x32xf32>
    %15 = arith.maximumf %13, %14 : vector<16x32xf32>
    %c0_12 = arith.constant 0 : index
    %c0_13 = arith.constant 0 : index
    %16 = vector.load %arg6[%c0_12, %c0_13] : memref<1x32xf32, #tpu.memory_space<vmem>>, vector<1x32xf32>
    %cst_14 = arith.constant dense<0.000000e+00> : vector<1x16xf32>
    %17 = tpu.matmul %16, %15, %cst_14 {dimension_numbers = #tpu.dot_dimension_numbers<[1], [1], [0], [0], [0, 0, 1, 0], [], []>} : vector<1x32xf32>, vector<16x32xf32>, vector<1x16xf32> -> vector<1x16xf32>
    %c0_15 = arith.constant 0 : index
    %c0_16 = arith.constant 0 : index
    %18 = vector.load %arg7[%c0_15, %c0_16] : memref<1x1xf32, #tpu.memory_space<vmem>>, vector<1x1xf32>
    %19 = vector.broadcast %18 : vector<1x1xf32> to vector<1x16xf32>
    %20 = arith.addf %17, %19 : vector<1x16xf32>
    %21 = arith.negf %20 : vector<1x16xf32>
    %22 = math.exp %21 : vector<1x16xf32>
    %cst_17 = arith.constant 1.000000e+00 : f32
    %23 = vector.broadcast %cst_17 : f32 to vector<1x16xf32>
    %24 = arith.addf %23, %22 : vector<1x16xf32>
    %25 = arith.divf %23, %24 : vector<1x16xf32>
    %26 = vector.shape_cast %25 : vector<1x16xf32> to vector<1x1x16xf32>
    %c0_18 = arith.constant 0 : index
    %c0_19 = arith.constant 0 : index
    %c0_20 = arith.constant 0 : index
    %27 = vector.load %arg8[%c0_18, %c0_19, %c0_20] : memref<1x1x16xf32, #tpu.memory_space<vmem>>, vector<1x1x16xf32>
    tpu.vector_store %arg8[%c0_18, %c0_19, %c0_20], %26 {strides = array<i32>} : memref<1x1x16xf32, #tpu.memory_space<vmem>>, vector<1x1x16xf32>,
    return
  }
  func.func @transform_0(%arg0: i32) -> (i32, i32) {
    %c0_i32 = arith.constant 0 : i32
    %c0_i32_0 = arith.constant 0 : i32
    return %arg0, %c0_i32 : i32, i32
  }
  func.func @transform_1(%arg0: i32) -> (i32, i32) {
    %c0_i32 = arith.constant 0 : i32
    %c0_i32_0 = arith.constant 0 : i32
    %c0_i32_1 = arith.constant 0 : i32
    return %c0_i32, %c0_i32_0 : i32, i32
  }
  func.func @transform_2(%arg0: i32) -> (i32, i32) {
    %c0_i32 = arith.constant 0 : i32
    %c0_i32_0 = arith.constant 0 : i32
    %c0_i32_1 = arith.constant 0 : i32
    return %c0_i32, %c0_i32_0 : i32, i32
  }
  func.func @transform_3(%arg0: i32) -> (i32, i32) {
    %c0_i32 = arith.constant 0 : i32
    %c0_i32_0 = arith.constant 0 : i32
    %c0_i32_1 = arith.constant 0 : i32
    return %c0_i32, %c0_i32_0 : i32, i32
  }
  func.func @transform_4(%arg0: i32) -> (i32, i32) {
    %c0_i32 = arith.constant 0 : i32
    %c0_i32_0 = arith.constant 0 : i32
    %c0_i32_1 = arith.constant 0 : i32
    return %c0_i32, %c0_i32_0 : i32, i32
  }
  func.func @transform_5(%arg0: i32) -> (i32, i32) {
    %c0_i32 = arith.constant 0 : i32
    %c0_i32_0 = arith.constant 0 : i32
    %c0_i32_1 = arith.constant 0 : i32
    return %c0_i32, %c0_i32_0 : i32, i32
  }
  func.func @transform_6(%arg0: i32) -> (i32, i32) {
    %c0_i32 = arith.constant 0 : i32
    %c0_i32_0 = arith.constant 0 : i32
    %c0_i32_1 = arith.constant 0 : i32
    return %c0_i32, %c0_i32_0 : i32, i32
  }
  func.func @transform_7(%arg0: i32) -> (i32, i32, i32) {
    %c0_i32 = arith.constant 0 : i32
    %c0_i32_0 = arith.constant 0 : i32
    %c0_i32_1 = arith.constant 0 : i32
    return %arg0, %c0_i32, %c0_i32_0 : i32, i32, i32
  }
}

</mosaic_0001>

<bundles_post_ra>
// kernel: tpu_custom_call.1
= control target key start
LH: loop header
LB: loop body
LE: loop exit
PB: predicated region body
PF: predicated region fallthrough
CT: control target
= control target key end

     0   :  { %s479_s0 = inlined_call_operand.vmem [shape: bf16[16,16], index: 0, kind: input, shape index: {}]   ;;  %s480_s1 = inlined_call_operand.vmem [shape: bf16[16,64], index: 1, kind: input, shape index: {}]   ;;  %s481_s2 = inlined_call_operand.vmem [shape: f32[1,64], index: 2, kind: input, shape index: {}]   ;;  %s482_s3 = inlined_call_operand.vmem [shape: bf16[64,32], index: 3, kind: input, shape index: {}]   ;;  %s483_s4 = inlined_call_operand.vmem [shape: f32[1,32], index: 4, kind: input, shape index: {}]   ;;  %s484_s5 = inlined_call_operand.vmem [shape: f32[1,32], index: 5, kind: input, shape index: {}]   ;;  %s485_s6 = inlined_call_operand.<no memory space> [shape: f32[1,1], index: 6, kind: input, shape index: {}]   ;;  %s486_s7 = inlined_call_operand.hbm [shape: f32[1,1,16], index: 7, kind: output, shape index: {}]  }
   0x1   :  { %v12_v0 = vstv %s485_s6 }
   0x2   :  { %13 = vst [vmem:[#allocation2] sm:$0x1] %v12_v0 }
   0x3   :  { %v358_v1 = vld [vmem:[%s480_s1] sm:$0xff]   ;;  %v392_v2 = vmov 0.0   ;;  %vm393_vm0 = vmmov 0   ;;  %vm52_vm1 = vcmask 130048   ;;  %v361_v5 = vld [vmem:[%s482_s3 + $0x8] sm:$0xff]  }
   0x4   :  { %323 = vmatprep.subr.bf16.mxu0 %v392_v2  ;;  %v359_v3 = vld [vmem:[%s479_s0] sm:$0xff]   ;;  %329 = vmatprep.subr.bf16.mxu1 %v392_v2 }
   0x5   :  { %324 = vmatpush3.bf16.msra.mxu0 %v358_v1  ;;  %325 = vmatprep.mubr.msk.bf16.mxu0 %vm393_vm0, %v392_v2  ;;  %v360_v4 = vld [vmem:[%s482_s3] sm:$0xff]  }
   0x6   :  { %337 = vmatprep.mubr.msk.bf16.mxu1 %vm393_vm0, %v392_v2  ;;  %330 = vmatpush3.bf16.msra.mxu1 %v360_v4 }
   0x7   :  { %331 = vmatprep.subr.bf16.mxu1 %v392_v2 }
   0x8   :  { %326 = vmatmul.mubr.msk.bf16.vlgmr.msra.gmra.mrb[0].mxu0 %vm52_vm1, %v359_v3 }
   0x9   :  { %14 = vsyncpa [#allocation4], 0  ;;  %345 = vmatprep.mubr.msk.f32.mxu0 %vm393_vm0, %v392_v2  ;;  %v362_v6 = vld [vmem:[%s482_s3 + $0x10] sm:$0xff]   ;;  %v363_v7 = vld [vmem:[%s482_s3 + $0x18] sm:$0xff]   ;;  %vm139_vm2 = vcmask 523264   ;;  %v394_v18 = vmov 0.0|0.0   ;;  %v193_v32 = vlaneseq }
   0xa   :  { %332 = vmatpush3.bf16.msra.mxu1 %v361_v5  ;;  %v299_v8 = vld [vmem:[%s481_s2] ss:$0 sm:$0xff]  ;;  %348 = vmatprep.subr.bf16.mxu0 %v394_v18  ;;  %v395_v20 = vmov 0   ;;  %vm197_vm3 = vcmask 261120   ;;  %vm283_vm5 = vcmask 122880  }
   0xb   :  { %333 = vmatprep.subr.bf16.mxu1 %v392_v2  ;;  %v187_v19 = vld [vmem:[#allocation2] sm:$0x1]  ;;  %357 = vset.pattern.permute.xlu0 %v395_v20  ;;  %vm350_vm4 = vmpackc.low %vm197_vm3, %vm197_vm3  ;;  %v194_v33 = vshrl.u32 %v193_v32, 7 }
   0xc   :  { %190 = vperm.xlu0 %357, %v187_v19   ;;  %v303_v21 = vld [vmem:[%s483_s4] ss:$0 sm:$0xff]  ;;  %s396_s4 = smov [#allocation3]  }
   0xd   :  { %v186_v31 = vld [vmem:[%s484_s5] sm:$0x1]  ;;  %v195_v34 = vsub.s32 0, %v194_v33  ;;  %s291_s16 = sshll.u32 %s396_s4, 4  ;;  %s292_s16 = int_to_ptr.vmem [resolvable:$true] %s291_s16 }
   0xe   :  { %334 = vmatpush3.bf16.msra.mxu1 %v362_v6  ;;  %s368_s5 = scalar_lea.vmem %s292_s16, 16  ;;  %s372_s17 = scalar_lea.vmem %s292_s16, 32 }
   0xf   :  { %335 = vmatprep.subr.bf16.mxu1 %v392_v2  ;;  %p369_p0 = scmp.ne.s32.totalorder %s292_s16, %s368_s5  ;;  %p373_p1 = scmp.lt.s32.totalorder %s292_s16, %s292_s16 }
  0x10   :  { %p374_p2 = scmp.lt.s32.totalorder %s372_s17, %s368_s5 }
  0x12   :  { %336 = vmatpush3.bf16.msra.mxu1 %v363_v7  ;;  %p375_p3 = por %p374_p2, %p373_p1 }
  0x14   :  { %p376_p4 = pnand %p375_p3, %p369_p0 }
  0x8b   :  { %v191_v35 = vpop.permute.xlu0 %190 }
  0x8c   :  { %v196_v36 = vrot.slane %v191_v35, %v195_v34 }
  0xdb   :  { %v90_v9 = vpop.f32.mrb[0].mxu0 }
  0xdc   :  { %v91_v10 = vadd.f32 %v299_v8, %v90_v9  ;;  %v327_v11 = vpop.f32.mrb[1].mxu0 }
  0xdd   :  { %v93_v12 = vpop.f32.mrb[2].mxu0 }
  0xde   :  { %v94_v13 = vadd.f32 %v299_v8, %v93_v12  ;;  %v328_v14 = vpop.f32.mrb[3].mxu0  ;;  %v97_v15 = vmax.f32 %v91_v10, 0.0 }
  0xe0   :  { %v98_v16 = vmax.f32 %v94_v13, 0.0 }
  0xe2   :  { %v99_v17 = vpack.c.bf16 %v98_v16, %v97_v15 }
  0xe4   :  { %338 = vmatmul.mubr.msk.bf16.vlgmr.msra.gmra.mrb[0].mxu1 %vm139_vm2, %v99_v17 }
 0x1b7   :  { %v177_v22 = vpop.f32.mrb[0].mxu1 }
 0x1b8   :  { %v178_v23 = vadd.f32 %v303_v21, %v177_v22  ;;  %v339_v24 = vpop.f32.mrb[1].mxu1 }
 0x1b9   :  { %v180_v25 = vpop.f32.mrb[2].mxu1 }
 0x1ba   :  { %v181_v26 = vadd.f32 %v303_v21, %v180_v25  ;;  %v340_v27 = vpop.f32.mrb[3].mxu1  ;;  %v184_v28 = vmax.f32 %v178_v23, 0.0 }
 0x1bc   :  { %v185_v29 = vmax.f32 %v181_v26, 0.0 }
 0x1be   :  { %v349_v30 = vpack.c.bf16 %v185_v29, %v184_v28 }
 0x1c0   :  { %351 = vmatpush3.bf16.xpose.msk.msra.mxu0 %vm350_vm4, %v349_v30 }
 0x1c7   :  { %346 = vmatmul.mubr.msk.f32.vlgmr.msra.gmra.mrb[4].mxu0 %vm197_vm3, %v186_v31 }
 0x29a   :  { %v273_v37 = vpop.f32.mrb[4].mxu0 }
 0x29b   :  { %v274_v38 = vadd.f32 %v273_v37, %v196_v36  ;;  %v347_v39 = vpop.f32.mrb[5].mxu0 }
 0x29d   :  { %v312_v40 = vmul.f32 -1.442695, %v274_v38 }
 0x29f   :  { %364 = vpow2.f32 %v312_v40 }
 0x2a9   :  { %v365_v41 = vpop.eup %364 }
 0x2aa   :  { %v280_v42 = vadd.f32 1.0, %v365_v41 }
 0x2ac   :  { %366 = vrcp.f32 %v280_v42 }
 0x2b6   :  { %v367_v43 = vpop.eup %366 }
 0x2b7   :  { %284 = vst.msk [vmem:[#allocation3] sm:$0x1] %vm283_vm5, %v367_v43 }
 0x2b8   :  { %379 = shalt.err (!%p376_p4)
}
 0x2b9   :  { %s380_s20 = scalar_lea.hbm %s486_s7, 16 }
 0x2ba   :  { %p381_p5 = scmp.ne.s32.totalorder %s486_s7, %s380_s20  ;;  %p384_p6 = scmp.lt.u32.totalorder %s380_s20, %s486_s7 }
 0x2bc   :  { %p386_p7 = pnand %p384_p6, %p381_p5 }
 0x2be   :  { %389 = shalt.err (!%p386_p7)
}
 0x2bf   :  { %294 = dma.vmem_to_hbm [thread:$0]  %s292_s16, 16, %s486_s7, [#allocation4]  }
 0x2c0   :  { %390 = dma.done.wait [#allocation4], 16  }
 0x2c1   :  { %391 = vsyncadd [#allocation4], 4294967280 }
 0x2c2   :  { %298 = vsyncpa [#allocation4], 1 }

</bundles_post_ra>
